<compile_context>
chip_gen: v5e
topology: v5e:2x2
jax: 0.10.0
libtpu: 0.0.40
codegen_flags: <defaults>
</compile_context>

<pallas_src>
import jax
import jax.numpy as jnp
from jax.experimental import pallas as pl
from jax.experimental.pallas import tpu as pltpu

_LANES = 128
_SUBLANES = 8


def _cdiv(a, b):
    return (a + b - 1) // b


def _l2loss_partial_kernel(pred_ref, gt_ref, mask_ref, out_ref):
    """Per-tile partial reductions, folded to (8, 128) slabs (VPU-only)."""
    p = pred_ref[...].astype(jnp.float32)
    g = gt_ref[...].astype(jnp.float32)
    m = mask_ref[...].astype(jnp.float32)

    d = p - g

    def fold(x):
        # (tile_rows, 128) -> (tile_rows//8, 8, 128) -> sum over leading axis.
        # Sublane-tile-aligned regrouping + elementwise adds; no cross-lane work.
        return jnp.sum(x.reshape(-1, _SUBLANES, _LANES), axis=0)

    out_ref[0, 0, :, :] = fold(d * d)                              # sum (pred-gt)^2
    out_ref[0, 1, :, :] = fold(m)                                  # sum mask
    out_ref[0, 2, :, :] = fold(jnp.where(m > 0, 1.0, 0.0))         # count(mask > 0)


def l2_loss(pred, gt, mask, *, tile_rows=2048):
    """Pallas L2Loss forward. pred/gt/mask: same shape (e.g. NCHW), any dtype."""
    assert pred.shape == gt.shape == mask.shape

    total = 1
    for s in pred.shape:
        total *= s

    rows = _cdiv(total, _LANES)
    # Clamp the tile to the problem size (rounded up to a sublane multiple) so
    # tiny inputs don't pay for a giant block; keep tile_rows % 8 == 0.
    tile_rows = max(_SUBLANES, min(tile_rows, _cdiv(rows, _SUBLANES) * _SUBLANES))
    tile_rows = _cdiv(tile_rows, _SUBLANES) * _SUBLANES

    num_tiles = _cdiv(rows, tile_rows)
    padded_rows = num_tiles * tile_rows
    padded_total = padded_rows * _LANES

    def to_slab(x):
        # Keep the caller's dtype (bf16 inputs halve HBM traffic); cast to f32
        # happens inside the kernel. Bool masks are widened for a clean layout.
        if x.dtype == jnp.bool_:
            x = x.astype(jnp.float32)
        flat = x.reshape(-1)
        if padded_total != total:
            flat = jnp.pad(flat, (0, padded_total - total))
        return flat.reshape(padded_rows, _LANES)

    pred2 = to_slab(pred)
    gt2 = to_slab(gt)
    mask2 = to_slab(mask)

    in_spec = pl.BlockSpec((tile_rows, _LANES), lambda i: (i, 0))
    out_spec = pl.BlockSpec((1, 3, _SUBLANES, _LANES), lambda i: (i, 0, 0, 0))

    # 3 inputs x 2 pipeline buffers x tile (worst-case f32) + headroom.
    tile_bytes = tile_rows * _LANES * 4
    vmem_limit = int(min(96 << 20, max(32 << 20, 3 * 2 * tile_bytes + (4 << 20))))

    partials = pl.pallas_call(
        _l2loss_partial_kernel,
        out_shape=jax.ShapeDtypeStruct(
            (num_tiles, 3, _SUBLANES, _LANES), jnp.float32
        ),
        grid_spec=pltpu.PrefetchScalarGridSpec(
            num_scalar_prefetch=0,
            grid=(num_tiles,),
            in_specs=[in_spec, in_spec, in_spec],
            out_specs=out_spec,
        ),
        compiler_params=pltpu.CompilerParams(
            dimension_semantics=("parallel",),
            vmem_limit_bytes=vmem_limit,
        ),
    )(pred2, gt2, mask2)

    # Final (tiny) scalar combine in plain JAX: tree-reduce the per-tile slabs.
    sq_sum = jnp.sum(partials[:, 0])
    mask_sum = jnp.sum(partials[:, 1])
    count = jnp.sum(partials[:, 2])

    mse = sq_sum / jnp.float32(total)
    return mse * mask_sum / count


def l2_loss_ref(pred, gt, mask):
    """Pure-JAX reference matching the PyTorch module exactly."""
    mse = jnp.mean((pred.astype(jnp.float32) - gt.astype(jnp.float32)) ** 2)
    error = mask.astype(jnp.float32) * mse
    return error.sum() / (mask > 0).sum().astype(jnp.float32)


if __name__ == "__main__":
    key = jax.random.PRNGKey(0)
    k1, k2, k3 = jax.random.split(key, 3)

    # NCHW inputs, small shapes: batch=2, channels=4, spatial=16x16
    N, C, H, W = 2, 4, 16, 16
    pred = jax.random.normal(k1, (N, C, H, W), dtype=jnp.float32)
    gt = jax.random.normal(k2, (N, C, H, W), dtype=jnp.float32)
    # binary-ish mask with some zeros
    mask = (jax.random.uniform(k3, (N, C, H, W)) > 0.3).astype(jnp.float32)

    out = jax.block_until_ready(l2_loss(pred, gt, mask))
    ref = jax.block_until_ready(l2_loss_ref(pred, gt, mask))
    assert jnp.allclose(out, ref, rtol=1e-5, atol=1e-5), (out, ref)

    # Also exercise a ragged shape (exercises the zero-padding path).
    pred_r = jax.random.normal(k1, (3, 5, 7, 11), dtype=jnp.float32)
    gt_r = jax.random.normal(k2, (3, 5, 7, 11), dtype=jnp.float32)
    mask_r = (jax.random.uniform(k3, (3, 5, 7, 11)) > 0.5).astype(jnp.float32)
    out_r = jax.block_until_ready(l2_loss(pred_r, gt_r, mask_r))
    ref_r = jax.block_until_ready(l2_loss_ref(pred_r, gt_r, mask_r))
    assert jnp.allclose(out_r, ref_r, rtol=1e-5, atol=1e-5), (out_r, ref_r)

    print("KERNEL_OK")
</pallas_src>

<mosaic_0001>
module attributes {stable_mosaic.version = 11 : i64} {
  func.func @_l2loss_partial_kernel(%arg0: i32, %arg1: memref<16x128xf32, #tpu.memory_space<vmem>>, %arg2: memref<16x128xf32, #tpu.memory_space<vmem>>, %arg3: memref<16x128xf32, #tpu.memory_space<vmem>>, %arg4: memref<1x3x8x128xf32, #tpu.memory_space<vmem>>) attributes {dimension_semantics = [#tpu.dimension_semantics<parallel>], iteration_bounds = array<i64: 1>, scalar_prefetch = 0 : i64, scratch_operands = 0 : i64, tpu.core_type = #tpu.core_type<tc>, window_params = [{transform_indices = @transform_0, window_bounds = array<i64: 16, 128>}, {transform_indices = @transform_1, window_bounds = array<i64: 16, 128>}, {transform_indices = @transform_2, window_bounds = array<i64: 16, 128>}, {transform_indices = @transform_3, window_bounds = array<i64: 1, 3, 8, 128>}]} {
    %c0 = arith.constant 0 : index
    %c0_0 = arith.constant 0 : index
    %0 = vector.load %arg1[%c0, %c0_0] : memref<16x128xf32, #tpu.memory_space<vmem>>, vector<16x128xf32>
    %c0_1 = arith.constant 0 : index
    %c0_2 = arith.constant 0 : index
    %1 = vector.load %arg2[%c0_1, %c0_2] : memref<16x128xf32, #tpu.memory_space<vmem>>, vector<16x128xf32>
    %c0_3 = arith.constant 0 : index
    %c0_4 = arith.constant 0 : index
    %2 = vector.load %arg3[%c0_3, %c0_4] : memref<16x128xf32, #tpu.memory_space<vmem>>, vector<16x128xf32>
    %3 = arith.subf %0, %1 : vector<16x128xf32>
    %4 = arith.mulf %3, %3 : vector<16x128xf32>
    %5 = vector.shape_cast %4 : vector<16x128xf32> to vector<2x8x128xf32>
    %cst = arith.constant dense<0.000000e+00> : vector<8x128xf32>
    %6 = vector.multi_reduction <add>, %5, %cst [0] : vector<2x8x128xf32> to vector<8x128xf32>
    %c0_5 = arith.constant 0 : index
    %c0_6 = arith.constant 0 : index
    %c0_7 = arith.constant 0 : index
    %c0_8 = arith.constant 0 : index
    %7 = vector.load %arg4[%c0_5, %c0_6, %c0_7, %c0_8] : memref<1x3x8x128xf32, #tpu.memory_space<vmem>>, vector<1x1x8x128xf32>
    %8 = vector.shape_cast %7 : vector<1x1x8x128xf32> to vector<8x128xf32>
    %9 = vector.shape_cast %6 : vector<8x128xf32> to vector<1x1x8x128xf32>
    tpu.vector_store %arg4[%c0_5, %c0_6, %c0_7, %c0_8], %9 {strides = array<i32>} : memref<1x3x8x128xf32, #tpu.memory_space<vmem>>, vector<1x1x8x128xf32>,
    %10 = vector.shape_cast %2 : vector<16x128xf32> to vector<2x8x128xf32>
    %cst_9 = arith.constant dense<0.000000e+00> : vector<8x128xf32>
    %11 = vector.multi_reduction <add>, %10, %cst_9 [0] : vector<2x8x128xf32> to vector<8x128xf32>
    %c0_10 = arith.constant 0 : index
    %c1 = arith.constant 1 : index
    %c0_11 = arith.constant 0 : index
    %c0_12 = arith.constant 0 : index
    %12 = vector.load %arg4[%c0_10, %c1, %c0_11, %c0_12] : memref<1x3x8x128xf32, #tpu.memory_space<vmem>>, vector<1x1x8x128xf32>
    %13 = vector.shape_cast %12 : vector<1x1x8x128xf32> to vector<8x128xf32>
    %14 = vector.shape_cast %11 : vector<8x128xf32> to vector<1x1x8x128xf32>
    tpu.vector_store %arg4[%c0_10, %c1, %c0_11, %c0_12], %14 {strides = array<i32>} : memref<1x3x8x128xf32, #tpu.memory_space<vmem>>, vector<1x1x8x128xf32>,
    %cst_13 = arith.constant 0.000000e+00 : f32
    %15 = vector.broadcast %cst_13 : f32 to vector<16x128xf32>
    %16 = arith.cmpf ogt, %2, %15 : vector<16x128xf32>
    %cst_14 = arith.constant 1.000000e+00 : f32
    %cst_15 = arith.constant 0.000000e+00 : f32
    %17 = vector.broadcast %cst_14 : f32 to vector<16x128xf32>
    %18 = vector.broadcast %cst_15 : f32 to vector<16x128xf32>
    %19 = arith.select %16, %17, %18 : vector<16x128xi1>, vector<16x128xf32>
    %20 = vector.shape_cast %19 : vector<16x128xf32> to vector<2x8x128xf32>
    %cst_16 = arith.constant dense<0.000000e+00> : vector<8x128xf32>
    %21 = vector.multi_reduction <add>, %20, %cst_16 [0] : vector<2x8x128xf32> to vector<8x128xf32>
    %c0_17 = arith.constant 0 : index
    %c2 = arith.constant 2 : index
    %c0_18 = arith.constant 0 : index
    %c0_19 = arith.constant 0 : index
    %22 = vector.load %arg4[%c0_17, %c2, %c0_18, %c0_19] : memref<1x3x8x128xf32, #tpu.memory_space<vmem>>, vector<1x1x8x128xf32>
    %23 = vector.shape_cast %22 : vector<1x1x8x128xf32> to vector<8x128xf32>
    %24 = vector.shape_cast %21 : vector<8x128xf32> to vector<1x1x8x128xf32>
    tpu.vector_store %arg4[%c0_17, %c2, %c0_18, %c0_19], %24 {strides = array<i32>} : memref<1x3x8x128xf32, #tpu.memory_space<vmem>>, vector<1x1x8x128xf32>,
    return
  }
  func.func @transform_0(%arg0: i32) -> (i32, i32) {
    %c0_i32 = arith.constant 0 : i32
    %c0_i32_0 = arith.constant 0 : i32
    return %arg0, %c0_i32 : i32, i32
  }
  func.func @transform_1(%arg0: i32) -> (i32, i32) {
    %c0_i32 = arith.constant 0 : i32
    %c0_i32_0 = arith.constant 0 : i32
    return %arg0, %c0_i32 : i32, i32
  }
  func.func @transform_2(%arg0: i32) -> (i32, i32) {
    %c0_i32 = arith.constant 0 : i32
    %c0_i32_0 = arith.constant 0 : i32
    return %arg0, %c0_i32 : i32, i32
  }
  func.func @transform_3(%arg0: i32) -> (i32, i32, i32, i32) {
    %c0_i32 = arith.constant 0 : i32
    %c0_i32_0 = arith.constant 0 : i32
    %c0_i32_1 = arith.constant 0 : i32
    %c0_i32_2 = arith.constant 0 : i32
    return %arg0, %c0_i32, %c0_i32_0, %c0_i32_1 : i32, i32, i32, i32
  }
}

</mosaic_0001>

<bundles_post_ra>
// kernel: tpu_custom_call.1
= control target key start
LH: loop header
LB: loop body
LE: loop exit
PB: predicated region body
PF: predicated region fallthrough
CT: control target
= control target key end

     0   :  { %8 = vsyncpa [#allocation3], 0  ;;  %s264_s0 = inlined_call_operand.hbm [shape: f32[16,128], index: 0, kind: input, shape index: {}]   ;;  %s265_s1 = inlined_call_operand.hbm [shape: f32[16,128], index: 1, kind: input, shape index: {}]   ;;  %s266_s2 = inlined_call_operand.hbm [shape: f32[16,128], index: 2, kind: input, shape index: {}]   ;;  %s267_s3 = inlined_call_operand.hbm [shape: f32[1,3,8,128], index: 3, kind: output, shape index: {}]  }
   0x1   :  { %9 = vsyncpa [#allocation6], 0 }
   0x2   :  { %10 = vsyncpa [#allocation4], 0  ;;  %s28_s14 = sshll.u32 %s265_s1, 4  ;;  %s213_s15 = smov [#allocation5]   ;;  %s29_s14 = int_to_ptr.hbm [resolvable:$true] %s28_s14 }
   0x3   :  { %s30_s16 = sshll.u32 %s213_s15, 4  ;;  %s15_s19 = sshll.u32 %s264_s0, 4  ;;  %s31_s16 = int_to_ptr.vmem [resolvable:$true] %s30_s16  ;;  %s16_s19 = int_to_ptr.hbm [resolvable:$true] %s15_s19 }
   0x4   :  { %s214_s20 = smov 128   ;;  %s215_s21 = smov 8  }
   0x5   :  { %36 = dma.hbm_to_vmem [thread:$0]  %s29_s14, 256, %s31_s16, [#allocation6], %s214_s20, %s214_s20, %s215_s21  }
   0x6   :  { %s216_s22 = smov [#allocation2]   ;;  %s41_s1 = sshll.u32 %s266_s2, 4  ;;  %s42_s1 = int_to_ptr.hbm [resolvable:$true] %s41_s1 }
   0x7   :  { %s17_s23 = sshll.u32 %s216_s22, 4  ;;  %s217_s0 = smov [#allocation7]   ;;  %s18_s23 = int_to_ptr.vmem [resolvable:$true] %s17_s23 }
   0x8   :  { %23 = dma.hbm_to_vmem [thread:$0]  %s16_s19, 256, %s18_s23, [#allocation3], %s214_s20, %s214_s20, %s215_s21  }
   0x9   :  { %s43_s26 = sshll.u32 %s217_s0, 4  ;;  %s44_s26 = int_to_ptr.vmem [resolvable:$true] %s43_s26 }
   0xa   :  { %49 = dma.hbm_to_vmem [thread:$0]  %s42_s1, 256, %s44_s26, [#allocation6], %s214_s20, %s214_s20, %s215_s21  }
   0xb   :  { %207 = dma.done.wait [#allocation3], 256  }
   0xc   :  { %208 = vsyncadd [#allocation3], 4294967040 }
   0xd   :  { %209 = dma.done.wait [#allocation6], 512  }
   0xe   :  { %210 = vsyncadd [#allocation6], 4294966784  ;;  %v62_v0 = vld [vmem:[#allocation2] sm:$0xff]  ;;  %v63_v1 = vld [vmem:[#allocation2 + $0x8] sm:$0xff]  ;;  %v218_v10 = vmov 0.0   ;;  %s219_s2 = smov [#allocation8]  }
   0xf   :  { %v64_v2 = vld [vmem:[#allocation5] sm:$0xff]  ;;  %v65_v3 = vld [vmem:[#allocation5 + $0x8] sm:$0xff]  ;;  %v66_v5 = vld [vmem:[#allocation7] sm:$0xff]  ;;  %s88_s27 = sshll.u32 %s219_s2, 4  ;;  %s90_s30 = sshll.u32 %s267_s3, 4  ;;  %s89_s27 = int_to_ptr.vmem [resolvable:$true] %s88_s27  ;;  %s91_s30 = int_to_ptr.hbm [resolvable:$true] %s90_s30 }
  0x10   :  { %v68_v4 = vsub.f32 %v62_v0, %v64_v2  ;;  %v67_v6 = vld [vmem:[#allocation7 + $0x8] sm:$0xff]  ;;  %v69_v7 = vsub.f32 %v63_v1, %v65_v3  ;;  %vm77_vm0 = vcmp.gt.f32.partialorder %v66_v5, 0.0 }
  0x11   :  { %v74_v8 = vadd.f32 %v67_v6, %v66_v5  ;;  %vm78_vm1 = vcmp.gt.f32.partialorder %v67_v6, 0.0  ;;  %v79_v11 = vsel %vm77_vm0, 1.0, %v218_v10 }
  0x12   :  { %v70_v9 = vmul.f32 %v68_v4, %v68_v4  ;;  %v80_v12 = vsel %vm78_vm1, 1.0, %v218_v10  ;;  %v71_v13 = vmul.f32 %v69_v7, %v69_v7 }
  0x13   :  { %76 = vst [vmem:[#allocation8 + $0x8] sm:$0xff] %v74_v8  ;;  %v81_v14 = vadd.f32 %v80_v12, %v79_v11 }
  0x14   :  { %v72_v15 = vadd.f32 %v71_v13, %v70_v9 }
  0x15   :  { %83 = vst [vmem:[#allocation8 + $0x10] sm:$0xff] %v81_v14 }
  0x16   :  { %73 = vst [vmem:[#allocation8] sm:$0xff] %v72_v15 }
  0x17   :  { %96 = dma.vmem_to_hbm [thread:$0]  %s89_s27, 384, %s91_s30, [#allocation4], %s214_s20, %s214_s20, %s215_s21  }
  0x18   :  { %211 = dma.done.wait [#allocation4], 384  }
  0x19   :  { %212 = vsyncadd [#allocation4], 4294966912 }
  0x1a   :  { %101 = vsyncpa [#allocation3], 1 }
  0x1b   :  { %102 = vsyncpa [#allocation6], 1 }
  0x1c   :  { %103 = vsyncpa [#allocation4], 1 }

</bundles_post_ra>
